<compile_context>
chip_gen: v5e
topology: v5e:2x2
jax: 0.10.0
libtpu: 0.0.40
codegen_flags: <defaults>
</compile_context>

<pallas_src>
import functools

import jax
import jax.numpy as jnp
from jax.experimental import pallas as pl
from jax.experimental.pallas import tpu as pltpu

EPS = 1e-5


# ------------------------------- Pallas kernel ----------------------------------

def _residual_block_kernel(x_ref, wc_ref, w2_ref, pp_ref, out_ref, *,
                           n_valid, seq_len, c_out):
    """Activations live in (channels, batch*length) layout.

    x_ref  : (Cin_p,   Npad)      f32   input activations (zero-padded rows/cols)
    wc_ref : (2*Cout_p, 3*Cin_p)  bf16  conv1 taps (rows 0:Cout_p) + residual 1x1
                                        folded as extra rows (center tap only)
    w2_ref : (Cout_p,  3*Cout_p)  bf16  conv2 taps
    pp_ref : (Cout_p, 8)          f32   packed per-channel params
                                        cols = [b1, g1, be1, b2, g2, be2, br, 0]
    out_ref: (Cout_p, Npad)       f32
    """
    x = x_ref[...]
    npad = x.shape[1]

    # Static index masks from a 2-D iota (avoid integer div/rem on the VPU: use
    # an exact float floor-division since all values are small integers).
    col = jax.lax.broadcasted_iota(jnp.int32, (1, npad), 1).astype(jnp.float32)
    q = jnp.floor((col + 0.5) * (1.0 / seq_len))          # col // seq_len
    pos = col - q * seq_len                               # col %  seq_len
    left_ok = jnp.where(pos > 0.5, 1.0, 0.0)              # has a left neighbour
    right_ok = jnp.where(pos < seq_len - 1.5, 1.0, 0.0)   # has a right neighbour
    valid = jnp.where(col < n_valid - 0.5, 1.0, 0.0)      # real (non-padded) column
    inv_n = 1.0 / n_valid

    def im2col3(a):
        # (C, Npad) -> (3C, Npad): rows = [a[p-1], a[p], a[p+1]], zeroed at sequence
        # edges (emulates Conv1d padding=1 and blocks taps crossing batch boundaries).
        a_m1 = pltpu.roll(a, 1, 1) * left_ok               # a[:, p-1]
        a_p1 = pltpu.roll(a, npad - 1, 1) * right_ok       # a[:, p+1]
        return jnp.concatenate([a_m1, a, a_p1], axis=0).astype(jnp.bfloat16)

    def batchnorm(h, gamma, beta):
        # Training-mode BN: biased stats over every (batch, length) position.
        # Single fused pass: sum + sum-of-squares, var = E[h^2] - mean^2.
        hm = h * valid
        s1 = jnp.sum(hm, axis=1, keepdims=True)
        s2 = jnp.sum(hm * hm, axis=1, keepdims=True)
        mean = s1 * inv_n
        var = s2 * inv_n - mean * mean
        return (h - mean) * jax.lax.rsqrt(var + EPS) * gamma + beta

    pp = pp_ref[...]
    b1, g1, be1 = pp[:, 0:1], pp[:, 1:2], pp[:, 2:3]
    b2, g2, be2 = pp[:, 3:4], pp[:, 4:5], pp[:, 5:6]
    br = pp[:, 6:7]

    # conv1 (k=3, pad=1) AND the residual 1x1 conv in a single bf16 MXU matmul.
    y = jnp.dot(wc_ref[...], im2col3(x), preferred_element_type=jnp.float32)
    h = y[:c_out] + b1
    res = y[c_out:] + br

    h = jnp.maximum(batchnorm(h, g1, be1), 0.0)            # BN1 + ReLU

    # conv2 (k=3, pad=1): one bf16 MXU matmul.
    h = jnp.dot(w2_ref[...], im2col3(h), preferred_element_type=jnp.float32) + b2
    h = batchnorm(h, g2, be2)                              # BN2

    out_ref[...] = jnp.maximum(h + res, 0.0)               # add residual + final ReLU


# ------------------------------- wrapper (glue) ----------------------------------

def _round_up(v, m):
    return (v + m - 1) // m * m


@jax.jit
def residual_block_1d(x, params):
    B, Cin, L = x.shape
    Cout = params['w1'].shape[0]
    N = B * L
    Npad = _round_up(N, 128)          # lane-dense working width
    Cin_p = _round_up(Cin, 8)         # sublane-aligned channel counts
    Cout_p = _round_up(Cout, 8)

    # layout plumbing: (B, Cin, L) -> (Cin, B*L), zero-pad channels & columns
    x2 = jnp.transpose(x, (1, 0, 2)).reshape(Cin, N)
    x2 = jnp.pad(x2, ((0, Cin_p - Cin), (0, Npad - N))).astype(jnp.float32)

    # conv1 taps packed for im2col (K = 3*Cin_p), residual 1x1 folded as extra rows
    w1p = jnp.pad(jnp.transpose(params['w1'], (0, 2, 1)),
                  ((0, Cout_p - Cout), (0, 0), (0, Cin_p - Cin)))
    w1p = w1p.reshape(Cout_p, 3 * Cin_p)
    if 'wr' in params:                                    # 1x1 projection (in_ch != out_ch)
        wr = params['wr'][:, :, 0]
        br = params['br']
    else:                                                 # identity residual (in_ch == out_ch)
        wr = jnp.eye(Cout, Cin, dtype=jnp.float32)
        br = jnp.zeros((Cout,), jnp.float32)
    wr = jnp.pad(wr, ((0, Cout_p - Cout), (0, Cin_p - Cin)))
    wr_taps = jnp.concatenate([jnp.zeros_like(wr), wr, jnp.zeros_like(wr)], axis=1)
    wc = jnp.concatenate([w1p, wr_taps], axis=0).astype(jnp.bfloat16)   # (2*Cout_p, 3*Cin_p)

    # conv2 taps packed: (Cout_p, 3*Cout_p)
    w2p = jnp.pad(jnp.transpose(params['w2'], (0, 2, 1)),
                  ((0, Cout_p - Cout), (0, 0), (0, Cout_p - Cout)))
    w2p = w2p.reshape(Cout_p, 3 * Cout_p).astype(jnp.bfloat16)

    # all per-channel vectors packed into a single (Cout_p, 8) input
    def colv(v):
        return jnp.pad(v.astype(jnp.float32), (0, Cout_p - Cout)).reshape(Cout_p, 1)
    pp = jnp.concatenate([colv(params['b1']), colv(params['g1']), colv(params['be1']),
                          colv(params['b2']), colv(params['g2']), colv(params['be2']),
                          colv(br), jnp.zeros((Cout_p, 1), jnp.float32)], axis=1)

    kernel = functools.partial(_residual_block_kernel,
                               n_valid=N, seq_len=L, c_out=Cout_p)
    vmem = pl.BlockSpec(memory_space=pltpu.MemorySpace.VMEM)
    # TODO(synk): for production-size B*L add a lane-tiled grid with a two-pass
    # (stats-accumulate then normalize) structure, since training-mode BatchNorm
    # statistics span the whole (B, L); at these sizes everything fits VMEM.
    out2 = pl.pallas_call(
        kernel,
        out_shape=jax.ShapeDtypeStruct((Cout_p, Npad), jnp.float32),
        in_specs=[vmem, vmem, vmem, vmem],
        out_specs=vmem,
        compiler_params=pltpu.CompilerParams(vmem_limit_bytes=64 * 1024 * 1024),
    )(x2, wc, w2p, pp)

    out = out2[:Cout, :N].reshape(Cout, B, L)
    return jnp.transpose(out, (1, 0, 2))                  # back to (B, Cout, L)


# --------------------------- pure-JAX reference (check) --------------------------

def reference(x, p):
    dn = ('NCH', 'OIH', 'NCH')

    def conv(x, w, b, pad):
        y = jax.lax.conv_general_dilated(x, w, (1,), [(pad, pad)], dimension_numbers=dn)
        return y + b.reshape(1, -1, 1)

    def bn(h, g, be):
        mean = jnp.mean(h, axis=(0, 2), keepdims=True)
        var = jnp.mean((h - mean) ** 2, axis=(0, 2), keepdims=True)
        return (h - mean) * jax.lax.rsqrt(var + EPS) * g.reshape(1, -1, 1) + be.reshape(1, -1, 1)

    h = conv(x, p['w1'], p['b1'], 1)
    h = jnp.maximum(bn(h, p['g1'], p['be1']), 0.0)
    h = conv(h, p['w2'], p['b2'], 1)
    h = bn(h, p['g2'], p['be2'])
    res = conv(x, p['wr'], p['br'], 0)
    return jnp.maximum(h + res, 0.0)


if __name__ == "__main__":
    B, Cin, Cout, L = 2, 4, 8, 16
    key = jax.random.PRNGKey(0)
    ks = jax.random.split(key, 12)
    params = {
        'w1': 0.3 * jax.random.normal(ks[0], (Cout, Cin, 3), jnp.float32),
        'b1': 0.1 * jax.random.normal(ks[1], (Cout,), jnp.float32),
        'g1': 1.0 + 0.1 * jax.random.normal(ks[2], (Cout,), jnp.float32),
        'be1': 0.1 * jax.random.normal(ks[3], (Cout,), jnp.float32),
        'w2': 0.3 * jax.random.normal(ks[4], (Cout, Cout, 3), jnp.float32),
        'b2': 0.1 * jax.random.normal(ks[5], (Cout,), jnp.float32),
        'g2': 1.0 + 0.1 * jax.random.normal(ks[6], (Cout,), jnp.float32),
        'be2': 0.1 * jax.random.normal(ks[7], (Cout,), jnp.float32),
        'wr': 0.3 * jax.random.normal(ks[8], (Cout, Cin, 1), jnp.float32),
        'br': 0.1 * jax.random.normal(ks[9], (Cout,), jnp.float32),
    }
    x = jax.random.normal(ks[10], (B, Cin, L), jnp.float32)

    out = jax.block_until_ready(residual_block_1d(x, params))
    ref = jax.block_until_ready(reference(x, params))
    assert out.shape == (B, Cout, L)
    assert bool(jnp.allclose(out, ref, atol=2e-2, rtol=2e-2)), \
        f"max abs err = {float(jnp.max(jnp.abs(out - ref)))}"
    print("KERNEL_OK")
</pallas_src>

<mosaic_0001>
module attributes {stable_mosaic.version = 11 : i64} {
  func.func @_residual_block_kernel(%arg0: memref<8x128xf32, #tpu.memory_space<vmem>>, %arg1: memref<16x24xbf16, #tpu.memory_space<vmem>>, %arg2: memref<8x24xbf16, #tpu.memory_space<vmem>>, %arg3: memref<8x8xf32, #tpu.memory_space<vmem>>, %arg4: memref<8x128xf32, #tpu.memory_space<vmem>>) attributes {dimension_semantics = [], scalar_prefetch = 0 : i64, scratch_operands = 0 : i64, tpu.core_type = #tpu.core_type<tc>} {
    %c0 = arith.constant 0 : index
    %c0_0 = arith.constant 0 : index
    %0 = vector.load %arg0[%c0, %c0_0] : memref<8x128xf32, #tpu.memory_space<vmem>>, vector<8x128xf32>
    %1 = tpu.iota {dimensions = array<i32: 1>} : vector<1x128xi32>
    %2 = arith.sitofp %1 : vector<1x128xi32> to vector<1x128xf32>
    %cst = arith.constant 5.000000e-01 : f32
    %3 = vector.broadcast %cst : f32 to vector<1x128xf32>
    %4 = arith.addf %2, %3 : vector<1x128xf32>
    %cst_1 = arith.constant 6.250000e-02 : f32
    %5 = vector.broadcast %cst_1 : f32 to vector<1x128xf32>
    %6 = arith.mulf %4, %5 : vector<1x128xf32>
    %7 = math.floor %6 : vector<1x128xf32>
    %cst_2 = arith.constant 1.600000e+01 : f32
    %8 = vector.broadcast %cst_2 : f32 to vector<1x128xf32>
    %9 = arith.mulf %7, %8 : vector<1x128xf32>
    %10 = arith.subf %2, %9 : vector<1x128xf32>
    %cst_3 = arith.constant 5.000000e-01 : f32
    %11 = vector.broadcast %cst_3 : f32 to vector<1x128xf32>
    %12 = arith.cmpf ogt, %10, %11 : vector<1x128xf32>
    %cst_4 = arith.constant 1.000000e+00 : f32
    %cst_5 = arith.constant 0.000000e+00 : f32
    %13 = vector.broadcast %cst_4 : f32 to vector<1x128xf32>
    %14 = vector.broadcast %cst_5 : f32 to vector<1x128xf32>
    %15 = arith.select %12, %13, %14 : vector<1x128xi1>, vector<1x128xf32>
    %cst_6 = arith.constant 1.450000e+01 : f32
    %16 = vector.broadcast %cst_6 : f32 to vector<1x128xf32>
    %17 = arith.cmpf olt, %10, %16 : vector<1x128xf32>
    %cst_7 = arith.constant 1.000000e+00 : f32
    %cst_8 = arith.constant 0.000000e+00 : f32
    %18 = vector.broadcast %cst_7 : f32 to vector<1x128xf32>
    %19 = vector.broadcast %cst_8 : f32 to vector<1x128xf32>
    %20 = arith.select %17, %18, %19 : vector<1x128xi1>, vector<1x128xf32>
    %cst_9 = arith.constant 3.150000e+01 : f32
    %21 = vector.broadcast %cst_9 : f32 to vector<1x128xf32>
    %22 = arith.cmpf olt, %2, %21 : vector<1x128xf32>
    %cst_10 = arith.constant 1.000000e+00 : f32
    %cst_11 = arith.constant 0.000000e+00 : f32
    %23 = vector.broadcast %cst_10 : f32 to vector<1x128xf32>
    %24 = vector.broadcast %cst_11 : f32 to vector<1x128xf32>
    %25 = arith.select %22, %23, %24 : vector<1x128xi1>, vector<1x128xf32>
    %c0_12 = arith.constant 0 : index
    %c0_13 = arith.constant 0 : index
    %26 = vector.load %arg3[%c0_12, %c0_13] : memref<8x8xf32, #tpu.memory_space<vmem>>, vector<8x8xf32>
    %27 = vector.extract_strided_slice %26 {offsets = [0, 0], sizes = [8, 1], strides = [1, 1]} : vector<8x8xf32> to vector<8x1xf32>
    %28 = vector.extract_strided_slice %26 {offsets = [0, 1], sizes = [8, 1], strides = [1, 1]} : vector<8x8xf32> to vector<8x1xf32>
    %29 = vector.extract_strided_slice %26 {offsets = [0, 2], sizes = [8, 1], strides = [1, 1]} : vector<8x8xf32> to vector<8x1xf32>
    %30 = vector.extract_strided_slice %26 {offsets = [0, 3], sizes = [8, 1], strides = [1, 1]} : vector<8x8xf32> to vector<8x1xf32>
    %31 = vector.extract_strided_slice %26 {offsets = [0, 4], sizes = [8, 1], strides = [1, 1]} : vector<8x8xf32> to vector<8x1xf32>
    %32 = vector.extract_strided_slice %26 {offsets = [0, 5], sizes = [8, 1], strides = [1, 1]} : vector<8x8xf32> to vector<8x1xf32>
    %33 = vector.extract_strided_slice %26 {offsets = [0, 6], sizes = [8, 1], strides = [1, 1]} : vector<8x8xf32> to vector<8x1xf32>
    %c0_14 = arith.constant 0 : index
    %c0_15 = arith.constant 0 : index
    %34 = vector.load %arg1[%c0_14, %c0_15] : memref<16x24xbf16, #tpu.memory_space<vmem>>, vector<16x24xbf16>
    %c1_i32 = arith.constant 1 : i32
    %35 = tpu.dynamic_rotate %0 by %c1_i32 dim 1 : vector<8x128xf32>, i32 -> vector<8x128xf32>
    %36 = vector.broadcast %15 : vector<1x128xf32> to vector<8x128xf32>
    %37 = arith.mulf %35, %36 : vector<8x128xf32>
    %c127_i32 = arith.constant 127 : i32
    %38 = tpu.dynamic_rotate %0 by %c127_i32 dim 1 : vector<8x128xf32>, i32 -> vector<8x128xf32>
    %39 = vector.broadcast %20 : vector<1x128xf32> to vector<8x128xf32>
    %40 = arith.mulf %38, %39 : vector<8x128xf32>
    %41 = tpu.concatenate %37, %0, %40 in 0 : vector<8x128xf32>, vector<8x128xf32>, vector<8x128xf32> -> vector<24x128xf32>
    %42 = arith.truncf %41 : vector<24x128xf32> to vector<24x128xbf16>
    %cst_16 = arith.constant dense<0.000000e+00> : vector<16x128xf32>
    %43 = tpu.matmul %34, %42, %cst_16 {dimension_numbers = #tpu.dot_dimension_numbers<[1], [0], [0], [1], [0, 0, 1, 1], [], []>} : vector<16x24xbf16>, vector<24x128xbf16>, vector<16x128xf32> -> vector<16x128xf32>
    %44 = vector.extract_strided_slice %43 {offsets = [0, 0], sizes = [8, 128], strides = [1, 1]} : vector<16x128xf32> to vector<8x128xf32>
    %45 = vector.broadcast %27 : vector<8x1xf32> to vector<8x128xf32>
    %46 = arith.addf %44, %45 : vector<8x128xf32>
    %47 = vector.extract_strided_slice %43 {offsets = [8, 0], sizes = [8, 128], strides = [1, 1]} : vector<16x128xf32> to vector<8x128xf32>
    %48 = vector.broadcast %33 : vector<8x1xf32> to vector<8x128xf32>
    %49 = arith.addf %47, %48 : vector<8x128xf32>
    %50 = vector.broadcast %25 : vector<1x128xf32> to vector<8x128xf32>
    %51 = arith.mulf %46, %50 : vector<8x128xf32>
    %cst_17 = arith.constant dense<0.000000e+00> : vector<8xf32>
    %52 = vector.multi_reduction <add>, %51, %cst_17 [1] : vector<8x128xf32> to vector<8xf32>
    %53 = vector.shape_cast %52 : vector<8xf32> to vector<8x1xf32>
    %54 = arith.mulf %51, %51 : vector<8x128xf32>
    %cst_18 = arith.constant dense<0.000000e+00> : vector<8xf32>
    %55 = vector.multi_reduction <add>, %54, %cst_18 [1] : vector<8x128xf32> to vector<8xf32>
    %56 = vector.shape_cast %55 : vector<8xf32> to vector<8x1xf32>
    %cst_19 = arith.constant 3.125000e-02 : f32
    %57 = vector.broadcast %cst_19 : f32 to vector<8x1xf32>
    %58 = arith.mulf %53, %57 : vector<8x1xf32>
    %cst_20 = arith.constant 3.125000e-02 : f32
    %59 = vector.broadcast %cst_20 : f32 to vector<8x1xf32>
    %60 = arith.mulf %56, %59 : vector<8x1xf32>
    %61 = arith.mulf %58, %58 : vector<8x1xf32>
    %62 = arith.subf %60, %61 : vector<8x1xf32>
    %63 = vector.broadcast %58 : vector<8x1xf32> to vector<8x128xf32>
    %64 = arith.subf %46, %63 : vector<8x128xf32>
    %cst_21 = arith.constant 9.99999974E-6 : f32
    %65 = vector.broadcast %cst_21 : f32 to vector<8x1xf32>
    %66 = arith.addf %62, %65 : vector<8x1xf32>
    %67 = math.rsqrt %66 : vector<8x1xf32>
    %68 = vector.broadcast %67 : vector<8x1xf32> to vector<8x128xf32>
    %69 = arith.mulf %64, %68 : vector<8x128xf32>
    %70 = vector.broadcast %28 : vector<8x1xf32> to vector<8x128xf32>
    %71 = arith.mulf %69, %70 : vector<8x128xf32>
    %72 = vector.broadcast %29 : vector<8x1xf32> to vector<8x128xf32>
    %73 = arith.addf %71, %72 : vector<8x128xf32>
    %cst_22 = arith.constant 0.000000e+00 : f32
    %74 = vector.broadcast %cst_22 : f32 to vector<8x128xf32>
    %75 = arith.maximumf %73, %74 : vector<8x128xf32>
    %c0_23 = arith.constant 0 : index
    %c0_24 = arith.constant 0 : index
    %76 = vector.load %arg2[%c0_23, %c0_24] : memref<8x24xbf16, #tpu.memory_space<vmem>>, vector<8x24xbf16>
    %c1_i32_25 = arith.constant 1 : i32
    %77 = tpu.dynamic_rotate %75 by %c1_i32_25 dim 1 : vector<8x128xf32>, i32 -> vector<8x128xf32>
    %78 = vector.broadcast %15 : vector<1x128xf32> to vector<8x128xf32>
    %79 = arith.mulf %77, %78 : vector<8x128xf32>
    %c127_i32_26 = arith.constant 127 : i32
    %80 = tpu.dynamic_rotate %75 by %c127_i32_26 dim 1 : vector<8x128xf32>, i32 -> vector<8x128xf32>
    %81 = vector.broadcast %20 : vector<1x128xf32> to vector<8x128xf32>
    %82 = arith.mulf %80, %81 : vector<8x128xf32>
    %83 = tpu.concatenate %79, %75, %82 in 0 : vector<8x128xf32>, vector<8x128xf32>, vector<8x128xf32> -> vector<24x128xf32>
    %84 = arith.truncf %83 : vector<24x128xf32> to vector<24x128xbf16>
    %cst_27 = arith.constant dense<0.000000e+00> : vector<8x128xf32>
    %85 = tpu.matmul %76, %84, %cst_27 {dimension_numbers = #tpu.dot_dimension_numbers<[1], [0], [0], [1], [0, 0, 1, 1], [], []>} : vector<8x24xbf16>, vector<24x128xbf16>, vector<8x128xf32> -> vector<8x128xf32>
    %86 = vector.broadcast %30 : vector<8x1xf32> to vector<8x128xf32>
    %87 = arith.addf %85, %86 : vector<8x128xf32>
    %88 = vector.broadcast %25 : vector<1x128xf32> to vector<8x128xf32>
    %89 = arith.mulf %87, %88 : vector<8x128xf32>
    %cst_28 = arith.constant dense<0.000000e+00> : vector<8xf32>
    %90 = vector.multi_reduction <add>, %89, %cst_28 [1] : vector<8x128xf32> to vector<8xf32>
    %91 = vector.shape_cast %90 : vector<8xf32> to vector<8x1xf32>
    %92 = arith.mulf %89, %89 : vector<8x128xf32>
    %cst_29 = arith.constant dense<0.000000e+00> : vector<8xf32>
    %93 = vector.multi_reduction <add>, %92, %cst_29 [1] : vector<8x128xf32> to vector<8xf32>
    %94 = vector.shape_cast %93 : vector<8xf32> to vector<8x1xf32>
    %cst_30 = arith.constant 3.125000e-02 : f32
    %95 = vector.broadcast %cst_30 : f32 to vector<8x1xf32>
    %96 = arith.mulf %91, %95 : vector<8x1xf32>
    %cst_31 = arith.constant 3.125000e-02 : f32
    %97 = vector.broadcast %cst_31 : f32 to vector<8x1xf32>
    %98 = arith.mulf %94, %97 : vector<8x1xf32>
    %99 = arith.mulf %96, %96 : vector<8x1xf32>
    %100 = arith.subf %98, %99 : vector<8x1xf32>
    %101 = vector.broadcast %96 : vector<8x1xf32> to vector<8x128xf32>
    %102 = arith.subf %87, %101 : vector<8x128xf32>
    %cst_32 = arith.constant 9.99999974E-6 : f32
    %103 = vector.broadcast %cst_32 : f32 to vector<8x1xf32>
    %104 = arith.addf %100, %103 : vector<8x1xf32>
    %105 = math.rsqrt %104 : vector<8x1xf32>
    %106 = vector.broadcast %105 : vector<8x1xf32> to vector<8x128xf32>
    %107 = arith.mulf %102, %106 : vector<8x128xf32>
    %108 = vector.broadcast %31 : vector<8x1xf32> to vector<8x128xf32>
    %109 = arith.mulf %107, %108 : vector<8x128xf32>
    %110 = vector.broadcast %32 : vector<8x1xf32> to vector<8x128xf32>
    %111 = arith.addf %109, %110 : vector<8x128xf32>
    %112 = arith.addf %111, %49 : vector<8x128xf32>
    %cst_33 = arith.constant 0.000000e+00 : f32
    %113 = vector.broadcast %cst_33 : f32 to vector<8x128xf32>
    %114 = arith.maximumf %112, %113 : vector<8x128xf32>
    %c0_34 = arith.constant 0 : index
    %c0_35 = arith.constant 0 : index
    %115 = vector.load %arg4[%c0_34, %c0_35] : memref<8x128xf32, #tpu.memory_space<vmem>>, vector<8x128xf32>
    tpu.vector_store %arg4[%c0_34, %c0_35], %114 {strides = array<i32>} : memref<8x128xf32, #tpu.memory_space<vmem>>, vector<8x128xf32>,
    return
  }
}

</mosaic_0001>

<bundles_post_ra>
// kernel: residual_block_1d.1
= control target key start
LH: loop header
LB: loop body
LE: loop exit
PB: predicated region body
PF: predicated region fallthrough
CT: control target
= control target key end

     0   :  { %s216_s17 = smov 127   ;;  %s217_s18 = smov 1   ;;  %v19_v1 = vlaneseq  ;;  %v218_v8 = vmov 0   ;;  %v219_v11 = vmov 0.0   ;;  %vm53_vm1 = vcmask 1043456   ;;  %s287_s0 = inlined_call_operand.vmem [shape: f32[8,128], index: 0, kind: input, shape index: {}]   ;;  %s288_s3 = inlined_call_operand.vmem [shape: f32[8,8], index: 3, kind: input, shape index: {}]   ;;  %s289_s1 = inlined_call_operand.vmem [shape: bf16[16,24], index: 1, kind: input, shape index: {}]   ;;  %s290_s2 = inlined_call_operand.vmem [shape: bf16[8,24], index: 2, kind: input, shape index: {}]   ;;  %s291_s4 = inlined_call_operand.vmem [shape: f32[8,128], index: 4, kind: output, shape index: {}]  }
   0x1   :  { %v18_v0 = vld [vmem:[%s287_s0] sm:$0xff]  ;;  %205 = vset.pattern.permute.xlu1 %v218_v8  ;;  %vm49_vm3 = vcmask 195584   ;;  %v220_v22 = vmov 2   ;;  %v221_v23 = vmov 1   ;;  %v222_v51 = vmov 3  }
   0x2   :  { %39 = vrot.lane.b32.xlu0 %v18_v0, %s216_s17  ;;  %v20_v2 = vand.u32 127, %v19_v1  ;;  %v259_v7 = vld [vmem:[%s288_s3] sm:$0xff]  ;;  %206 = vset.pattern.permute.xlu2 %v221_v23  ;;  %v223_v60 = vmov 4   ;;  %v224_v61 = vmov 6   ;;  %v225_v1 = vmov 5  }
   0x3   :  { %73 = vperm.xlu1 %205, %v259_v7   ;;  %v194_v21 = vld [vmem:[%s289_s1] sm:$0xff]  ;;  %207 = vset.pattern.permute.xlu0 %v220_v22 }
   0x4   :  { %v21_v3 = vcvt.s32.f32 %v20_v2  ;;  %v116_v59 = vld [vmem:[%s290_s2] sm:$0xf] }
   0x6   :  { %v22_v4 = vadd.f32 0.5, %v21_v3  ;;  %vm31_vm4 = vcmp.lt.f32.partialorder %v21_v3, 31.5 }
   0x7   :  { %v32_v26 = vsel %vm31_vm4, 1.0, %v219_v11 }
   0x8   :  { %v23_v5 = vmul.f32 0.0625, %v22_v4 }
   0xa   :  { %36 = vrot.lane.b32.xlu0 %v18_v0, %s217_s18  ;;  %v24_v6 = vfloor.f32 %v23_v5 }
   0xb   :  { %210 = vset.pattern.permute.xlu1 %v224_v61 }
   0xc   :  { %v25_v9 = vmul.f32 16.0, %v24_v6 }
   0xe   :  { %v26_v10 = vsub.f32 %v21_v3, %v25_v9 }
  0x10   :  { %vm29_vm0 = vcmp.lt.f32.partialorder %v26_v10, 14.5  ;;  %vm27_vm2 = vcmp.gt.f32.partialorder %v26_v10, 0.5 }
  0x11   :  { %v262_v12 = vsel %vm29_vm0, 1.0, %v219_v11  ;;  %v28_v17 = vsel %vm27_vm2, 1.0, %v219_v11 }
  0x12   :  { %111 = vperm.xlu0 %207, %v259_v7  }
  0x1a   :  { %208 = vset.pattern.permute.xlu0 %v222_v51 }
  0x74   :  { %v40_v13 = vpop.permute.xlu0 %39 }
  0x75   :  { %v41_v14 = vmul.f32 %v40_v13, %v262_v12  ;;  %v74_v24 = vpop.permute.xlu1 %73 }
  0x77   :  { %v43_v15 = vpack.c.bf16 %v41_v14, %v41_v14 }
  0x79   :  { %v55_v16 = vsel %vm53_vm1, %v43_v15, 0 }
  0x7a   :  { %63 = vmatpush.bf16.msra.mxu0 %v55_v16 }
  0x7c   :  { %v37_v18 = vpop.permute.xlu0 %36 }
  0x7d   :  { %v38_v19 = vmul.f32 %v37_v18, %v28_v17 }
  0x7f   :  { %v42_v20 = vpack.c.bf16 %v18_v0, %v38_v19 }
  0x81   :  { %64 = vmatpush.bf16.msra.mxu0 %v42_v20 }
  0x84   :  { %192 = vmatmul.msk.bf16.vlgmr.msra.gmra.mxu0 %vm49_vm3, %v194_v21  ;;  %v112_v47 = vpop.permute.xlu0 %111 }
 0x101   :  { %v66_v25 = vpop.f32.mrf.mxu0 }
 0x102   :  { %v76_v27 = vadd.f32 %v74_v24, %v66_v25 }
 0x104   :  { %v82_v28 = vmul.f32 %v76_v27, %v32_v26 }
 0x106   :  { %83 = vadd.xlane.f32.xlu1 %v82_v28  ;;  %v85_v29 = vmul.f32 %v82_v28, %v82_v28 }
 0x108   :  { %86 = vadd.xlane.f32.xlu2 %v85_v29 }
 0x109   :  { %v68_v25 = vpop.f32.mrf.mxu0 }
 0x120   :  { %106 = vperm.xlu2 %206, %v259_v7  }
 0x179   :  { %v84_v30 = vpop.xlane.xlu1 %83 }
 0x17a   :  { %v88_v31 = vmul.f32 0.03125, %v84_v30 }
 0x17b   :  { %v87_v32 = vpop.xlane.xlu2 %86 }
 0x17c   :  { %v90_v33 = vmul.f32 %v88_v31, %v88_v31  ;;  %v89_v34 = vmul.f32 0.03125, %v87_v32  ;;  %v92_v43 = vsub.f32 %v76_v27, %v88_v31 }
 0x17e   :  { %v91_v35 = vsub.f32 %v89_v34, %v90_v33 }
 0x180   :  { %v93_v36 = vadd.f32 1e-05, %v91_v35 }
 0x182   :  { %212 = vrsqrt.f32 %v93_v36  ;;  %vm100_vm6 = vweird.f32 %v93_v36 }
 0x183   :  { %v107_v45 = vpop.permute.xlu2 %106 }
 0x188   :  { %v213_v37 = vpop.eup %212 }
 0x189   :  { %v95_v38 = vmul.f32 %v213_v37, %v93_v36  ;;  %vm101_vm5 = vweird.f32 %v213_v37 }
 0x18a   :  { %vm102_vm7 = vmor %vm100_vm6, %vm101_vm5 }
 0x18b   :  { %v96_v39 = vmul.f32 %v213_v37, %v95_v38 }
 0x18d   :  { %v97_v40 = vmul.f32 0.5, %v96_v39 }
 0x18f   :  { %v98_v41 = vsub.f32 1.5, %v97_v40 }
 0x191   :  { %v99_v42 = vmul.f32 %v213_v37, %v98_v41 }
 0x193   :  { %v103_v44 = vsel %vm102_vm7, %v213_v37, %v99_v42 }
 0x194   :  { %v104_v46 = vmul.f32 %v103_v44, %v92_v43 }
 0x196   :  { %v109_v48 = vmul.f32 %v107_v45, %v104_v46 }
 0x198   :  { %v114_v49 = vadd.f32 %v112_v47, %v109_v48 }
 0x19a   :  { %v115_v50 = vmax.f32 %v114_v49, 0.0 }
 0x19c   :  { %117 = vrot.lane.b32.xlu2 %v115_v50, %s217_s18  ;;  %120 = vrot.lane.b32.xlu0 %v115_v50, %s216_s17 }
 0x1a4   :  { %126 = vperm.xlu0 %208, %v259_v7  }
 0x1ac   :  { %209 = vset.pattern.permute.xlu0 %v223_v60 }
 0x1ad   :  { %172 = vperm.xlu0 %209, %v259_v7  }
 0x1b5   :  { %211 = vset.pattern.permute.xlu0 %v225_v1 }
 0x1b6   :  { %177 = vperm.xlu0 %211, %v259_v7  }
 0x1f6   :  { %v118_v53 = vpop.permute.xlu2 %117 }
 0x1f7   :  { %v119_v56 = vmul.f32 %v118_v53, %v28_v17 }
 0x1f9   :  { %v123_v58 = vpack.c.bf16 %v115_v50, %v119_v56 }
 0x20e   :  { %v121_v52 = vpop.permute.xlu0 %120 }
 0x20f   :  { %v122_v54 = vmul.f32 %v121_v52, %v262_v12 }
 0x211   :  { %v124_v55 = vpack.c.bf16 %v122_v54, %v122_v54 }
 0x213   :  { %v133_v57 = vsel %vm53_vm1, %v124_v55, 0 }
 0x214   :  { %141 = vmatpush.bf16.msra.mxu1 %v133_v57 }
 0x216   :  { %v127_v62 = vpop.permute.xlu0 %126 }
 0x218   :  { %142 = vmatpush.bf16.msra.mxu1 %v123_v58 }
 0x21b   :  { %193 = vmatmul.msk.bf16.vlgmr.msra.gmra.mxu1 %vm49_vm3, %v116_v59 }
 0x21f   :  { %v173_v16 = vpop.permute.xlu0 %172 }
 0x228   :  { %v178_v23 = vpop.permute.xlu0 %177 }
 0x298   :  { %v144_v63 = vpop.f32.mrf.mxu1 }
 0x299   :  { %v145_v0 = vadd.f32 %v144_v63, %v127_v62 }
 0x29b   :  { %v148_v2 = vmul.f32 %v145_v0, %v32_v26 }
 0x29d   :  { %149 = vadd.xlane.f32.xlu2 %v148_v2  ;;  %v151_v3 = vmul.f32 %v148_v2, %v148_v2 }
 0x29f   :  { %152 = vadd.xlane.f32.xlu1 %v151_v3 }
 0x2a0   :  { %v146_v4 = vpop.f32.mrf.mxu1 }
 0x2b8   :  { %78 = vperm.xlu1 %210, %v259_v7  }
 0x310   :  { %v150_v5 = vpop.xlane.xlu2 %149 }
 0x311   :  { %v154_v6 = vmul.f32 0.03125, %v150_v5 }
 0x312   :  { %v153_v8 = vpop.xlane.xlu1 %152 }
 0x313   :  { %v156_v9 = vmul.f32 %v154_v6, %v154_v6  ;;  %v155_v10 = vmul.f32 0.03125, %v153_v8  ;;  %v158_v20 = vsub.f32 %v145_v0, %v154_v6 }
 0x315   :  { %v157_v11 = vsub.f32 %v155_v10, %v156_v9 }
 0x317   :  { %v159_v12 = vadd.f32 1e-05, %v157_v11 }
 0x319   :  { %214 = vrsqrt.f32 %v159_v12  ;;  %vm166_vm9 = vweird.f32 %v159_v12 }
 0x31f   :  { %v215_v13 = vpop.eup %214 }
 0x320   :  { %v161_v14 = vmul.f32 %v215_v13, %v159_v12  ;;  %vm167_vm8 = vweird.f32 %v215_v13 }
 0x321   :  { %vm168_vm10 = vmor %vm166_vm9, %vm167_vm8 }
 0x322   :  { %v162_v15 = vmul.f32 %v215_v13, %v161_v14 }
 0x324   :  { %v163_v17 = vmul.f32 0.5, %v162_v15 }
 0x326   :  { %v164_v18 = vsub.f32 1.5, %v163_v17 }
 0x328   :  { %v165_v19 = vmul.f32 %v215_v13, %v164_v18 }
 0x32a   :  { %v169_v7 = vsel %vm168_vm10, %v215_v13, %v165_v19  ;;  %v79_v22 = vpop.permute.xlu1 %78 }
 0x32b   :  { %v170_v21 = vmul.f32 %v169_v7, %v158_v20  ;;  %v81_v26 = vadd.f32 %v79_v22, %v68_v25 }
 0x32d   :  { %v175_v24 = vmul.f32 %v173_v16, %v170_v21 }
 0x32f   :  { %v180_v27 = vadd.f32 %v178_v23, %v175_v24 }
 0x331   :  { %v181_v28 = vadd.f32 %v180_v27, %v81_v26 }
 0x333   :  { %v182_v29 = vmax.f32 %v181_v28, 0.0 }
 0x335   :  { %183 = vst [vmem:[%s291_s4] sm:$0xff] %v182_v29 }

</bundles_post_ra>
